<compile_context>
chip_gen: v7x
topology: tpu7x:2x2x1
jax: 0.10.0
libtpu: 0.0.40
codegen_flags: <defaults>
</compile_context>

<pallas_src>
import functools

import jax
import jax.numpy as jnp
from jax.experimental import pallas as pl
from jax.experimental.pallas import tpu as pltpu

N_DIM = 3            # n_dim  (data dimensionality)
N_STEPS = 200        # n_steps (diffusion steps)
TIME_EMBED_DIM = N_DIM
HIDDEN = 32          # hidden width of the residual MLP
N_BLOCKS = 2         # number of residual blocks
BATCH_TILE = 256     # batch tile (multiple of 128; fits all generations' VMEM easily)


def _ddpm_kernel(xt_ref, tt_ref,
                 wt1t_ref, bt1t_ref, wt2t_ref, bt2t_ref,
                 wixt_ref, witt_ref, bint_ref,
                 bw1t_ref, bb1t_ref, bw2t_ref, bb2t_ref,
                 woutt_ref, boutt_ref,
                 o_ref):
    """All activations are transposed: [features (sublanes), batch_tile (lanes)]."""
    f32 = jnp.float32
    x = xt_ref[...]                      # [N_DIM, TB]
    t = tt_ref[...]                      # [1, TB]   (float timesteps)

    # ---- TimeEmbedding layer 1: Linear(1, D) + ReLU  (pure VPU broadcast-FMA) ----
    h_t = jnp.maximum(wt1t_ref[...] * t + bt1t_ref[...], 0.0)        # [D, TB]

    # ---- TimeEmbedding layer 2: Linear(D, D) as D broadcast-FMAs (keeps the
    #      3x3 matmul off the MXU; frees the extended slot for the 32x32 dots) ----
    wt2t = wt2t_ref[...]                                             # [D, D] = wt2.T
    te = bt2t_ref[...] + wt2t[:, 0:1] * h_t[0:1, :]                  # [D, TB]
    for j in range(1, TIME_EMBED_DIM):
        te = te + wt2t[:, j:j + 1] * h_t[j:j + 1, :]

    # ---- Input projection: cat([x, te]) @ W_in  as K=6 broadcast-FMAs ----------
    wixt = wixt_ref[...]                                             # [H, N_DIM]
    witt = witt_ref[...]                                             # [H, D]
    h = bint_ref[...] + wixt[:, 0:1] * x[0:1, :]                     # [H, TB]
    for j in range(1, N_DIM):
        h = h + wixt[:, j:j + 1] * x[j:j + 1, :]
    for j in range(TIME_EMBED_DIM):
        h = h + witt[:, j:j + 1] * te[j:j + 1, :]
    h = jnp.maximum(h, 0.0)                                          # [H, TB]

    # ---- Residual MLP blocks (32x32 weights, full-width TB on the MXU) ---------
    for i in range(N_BLOCKS):                                        # static unroll
        z = jnp.maximum(
            jnp.dot(bw1t_ref[i], h, preferred_element_type=f32) + bb1t_ref[i], 0.0)
        z = jnp.dot(bw2t_ref[i], z, preferred_element_type=f32) + bb2t_ref[i]
        h = jnp.maximum(h + z, 0.0)

    # ---- Output projection (lane-dense [N_DIM, TB] store, no masked vst) -------
    o_ref[...] = (jnp.dot(woutt_ref[...], h, preferred_element_type=f32)
                  + boutt_ref[...]).astype(o_ref.dtype)


def init_ddpm_params(key, n_dim=N_DIM, te_dim=TIME_EMBED_DIM,
                     hidden=HIDDEN, n_blocks=N_BLOCKS):
    """Deterministic synthetic parameters in the canonical [in, out] layout."""
    ks = jax.random.split(key, 8)
    scale = 0.1
    return {
        # TimeEmbedding
        "wt1": scale * jax.random.normal(ks[0], (1, te_dim), jnp.float32),
        "bt1": jnp.zeros((1, te_dim), jnp.float32),
        "wt2": scale * jax.random.normal(ks[1], (te_dim, te_dim), jnp.float32),
        "bt2": jnp.zeros((1, te_dim), jnp.float32),
        # ResidualMLPModel input projection, split into x-part and time-part
        "wix": scale * jax.random.normal(ks[2], (n_dim, hidden), jnp.float32),
        "wit": scale * jax.random.normal(ks[3], (te_dim, hidden), jnp.float32),
        "bin": jnp.zeros((1, hidden), jnp.float32),
        # Residual blocks (stacked along axis 0)
        "bw1": scale * jax.random.normal(ks[4], (n_blocks, hidden, hidden), jnp.float32),
        "bb1": jnp.zeros((n_blocks, 1, hidden), jnp.float32),
        "bw2": scale * jax.random.normal(ks[5], (n_blocks, hidden, hidden), jnp.float32),
        "bb2": jnp.zeros((n_blocks, 1, hidden), jnp.float32),
        # Output projection
        "wout": scale * jax.random.normal(ks[6], (hidden, n_dim), jnp.float32),
        "bout": jnp.zeros((1, n_dim), jnp.float32),
    }


@functools.partial(jax.jit, static_argnames=("tb",))
def ddpm_forward(x, t, params, tb=BATCH_TILE):
    """x: [B, n_dim] float32, t: [B] int -> predicted noise [B, n_dim]."""
    B, n_dim = x.shape
    B_pad = ((B + tb - 1) // tb) * tb          # pad batch to a whole number of tiles
    pad = B_pad - B

    # Batch-on-lanes layout: [features, batch]
    x_t = jnp.pad(x.astype(jnp.float32), ((0, pad), (0, 0))).T         # [n_dim, B_pad]
    t_t = jnp.pad(t.astype(jnp.float32), (0, pad)).reshape(1, B_pad)   # [1, B_pad]

    p = params
    # Transpose tiny weights once on the host side (layout plumbing, not compute).
    weights = (
        p["wt1"].T,                          # wt1t  [D, 1]
        p["bt1"].T,                          # bt1t  [D, 1]
        p["wt2"].T,                          # wt2t  [D, D]
        p["bt2"].T,                          # bt2t  [D, 1]
        p["wix"].T,                          # wixt  [H, n_dim]
        p["wit"].T,                          # witt  [H, D]
        p["bin"].T,                          # bint  [H, 1]
        jnp.transpose(p["bw1"], (0, 2, 1)),  # bw1t  [NB, H, H]
        jnp.transpose(p["bb1"], (0, 2, 1)),  # bb1t  [NB, H, 1]
        jnp.transpose(p["bw2"], (0, 2, 1)),  # bw2t  [NB, H, H]
        jnp.transpose(p["bb2"], (0, 2, 1)),  # bb2t  [NB, H, 1]
        p["wout"].T,                         # woutt [n_dim, H]
        p["bout"].T,                         # boutt [n_dim, 1]
    )

    grid = (B_pad // tb,)

    def batch_spec(rows):
        # Tile along the (lane-mapped) batch axis.
        return pl.BlockSpec((rows, tb), lambda i: (0, i))

    def const_spec(shape):
        n = len(shape)
        # Same block every grid step -> weight stays resident in VMEM.
        return pl.BlockSpec(shape, lambda i: (0,) * n)

    in_specs = ([batch_spec(n_dim), batch_spec(1)]
                + [const_spec(tuple(w.shape)) for w in weights])

    flops_per_row = (2 * TIME_EMBED_DIM                       # Linear(1, D)
                     + 2 * TIME_EMBED_DIM * TIME_EMBED_DIM    # Linear(D, D)
                     + 2 * (n_dim + TIME_EMBED_DIM) * HIDDEN  # input projection
                     + N_BLOCKS * 2 * 2 * HIDDEN * HIDDEN     # residual blocks
                     + 2 * HIDDEN * n_dim)                    # output projection
    weight_bytes = sum(int(w.size) * 4 for w in weights)
    cost = pl.CostEstimate(
        flops=int(B_pad) * int(flops_per_row),
        transcendentals=0,
        bytes_accessed=int(4 * B_pad * (2 * n_dim + 1)) + weight_bytes)

    out_t = pl.pallas_call(
        _ddpm_kernel,
        out_shape=jax.ShapeDtypeStruct((n_dim, B_pad), jnp.float32),
        grid=grid,
        in_specs=in_specs,
        out_specs=batch_spec(n_dim),
        compiler_params=pltpu.CompilerParams(
            dimension_semantics=("parallel",)),
        cost_estimate=cost,
    )(x_t, t_t, *weights)

    return out_t.T[:B]


def _reference_forward(x, t, p):
    """Pure-JAX reference of the same math (tiny linears written elementwise so
    the f32 reference matches the kernel's exact VPU FMAs; HxH blocks stay @)."""
    t_f = t.astype(jnp.float32)[:, None]
    h_t = jnp.maximum(t_f * p["wt1"] + p["bt1"], 0.0)                     # [B, D]
    te = p["bt2"] + sum(h_t[:, j:j + 1] * p["wt2"][j:j + 1, :]
                        for j in range(TIME_EMBED_DIM))
    h = (p["bin"]
         + sum(x[:, j:j + 1] * p["wix"][j:j + 1, :] for j in range(x.shape[1]))
         + sum(te[:, j:j + 1] * p["wit"][j:j + 1, :] for j in range(TIME_EMBED_DIM)))
    h = jnp.maximum(h, 0.0)
    for i in range(N_BLOCKS):
        z = jnp.maximum(h @ p["bw1"][i] + p["bb1"][i], 0.0)
        z = z @ p["bw2"][i] + p["bb2"][i]
        h = jnp.maximum(h + z, 0.0)
    return h @ p["wout"] + p["bout"]


if __name__ == "__main__":
    key = jax.random.PRNGKey(0)
    k_param, k_x, k_t = jax.random.split(key, 3)

    batch = 8
    params = init_ddpm_params(k_param)
    x = jax.random.normal(k_x, (batch, N_DIM), jnp.float32)
    t = jax.random.randint(k_t, (batch,), 0, N_STEPS, jnp.int32)

    noise = ddpm_forward(x, t, params)
    noise = jax.block_until_ready(noise)

    ref = _reference_forward(x, t, params)
    assert noise.shape == (batch, N_DIM)
    assert jnp.allclose(noise, ref, atol=1e-4, rtol=1e-4), "mismatch vs reference"

    print("KERNEL_OK")
</pallas_src>

<mosaic_0001>
module attributes {stable_mosaic.version = 11 : i64} {
  func.func @_ddpm_kernel(%arg0: i32, %arg1: memref<3x256xf32, #tpu.memory_space<vmem>>, %arg2: memref<1x256xf32, #tpu.memory_space<vmem>>, %arg3: memref<3x1xf32, #tpu.memory_space<vmem>>, %arg4: memref<3x1xf32, #tpu.memory_space<vmem>>, %arg5: memref<3x3xf32, #tpu.memory_space<vmem>>, %arg6: memref<3x1xf32, #tpu.memory_space<vmem>>, %arg7: memref<32x3xf32, #tpu.memory_space<vmem>>, %arg8: memref<32x3xf32, #tpu.memory_space<vmem>>, %arg9: memref<32x1xf32, #tpu.memory_space<vmem>>, %arg10: memref<2x32x32xf32, #tpu.memory_space<vmem>>, %arg11: memref<2x32x1xf32, #tpu.memory_space<vmem>>, %arg12: memref<2x32x32xf32, #tpu.memory_space<vmem>>, %arg13: memref<2x32x1xf32, #tpu.memory_space<vmem>>, %arg14: memref<3x32xf32, #tpu.memory_space<vmem>>, %arg15: memref<3x1xf32, #tpu.memory_space<vmem>>, %arg16: memref<3x256xf32, #tpu.memory_space<vmem>>) attributes {dimension_semantics = [#tpu.dimension_semantics<parallel>], iteration_bounds = array<i64: 1>, scalar_prefetch = 0 : i64, scratch_operands = 0 : i64, tpu.core_type = #tpu.core_type<tc>, window_params = [{transform_indices = @transform_0, window_bounds = array<i64: 3, 256>}, {transform_indices = @transform_1, window_bounds = array<i64: 1, 256>}, {pipeline_mode = #tpu.pipeline_mode<synchronous>, transform_indices = @transform_2, window_bounds = array<i64: 3, 1>}, {pipeline_mode = #tpu.pipeline_mode<synchronous>, transform_indices = @transform_3, window_bounds = array<i64: 3, 1>}, {pipeline_mode = #tpu.pipeline_mode<synchronous>, transform_indices = @transform_4, window_bounds = array<i64: 3, 3>}, {pipeline_mode = #tpu.pipeline_mode<synchronous>, transform_indices = @transform_5, window_bounds = array<i64: 3, 1>}, {pipeline_mode = #tpu.pipeline_mode<synchronous>, transform_indices = @transform_6, window_bounds = array<i64: 32, 3>}, {pipeline_mode = #tpu.pipeline_mode<synchronous>, transform_indices = @transform_7, window_bounds = array<i64: 32, 3>}, {pipeline_mode = #tpu.pipeline_mode<synchronous>, transform_indices = @transform_8, window_bounds = array<i64: 32, 1>}, {pipeline_mode = #tpu.pipeline_mode<synchronous>, transform_indices = @transform_9, window_bounds = array<i64: 2, 32, 32>}, {pipeline_mode = #tpu.pipeline_mode<synchronous>, transform_indices = @transform_10, window_bounds = array<i64: 2, 32, 1>}, {pipeline_mode = #tpu.pipeline_mode<synchronous>, transform_indices = @transform_11, window_bounds = array<i64: 2, 32, 32>}, {pipeline_mode = #tpu.pipeline_mode<synchronous>, transform_indices = @transform_12, window_bounds = array<i64: 2, 32, 1>}, {pipeline_mode = #tpu.pipeline_mode<synchronous>, transform_indices = @transform_13, window_bounds = array<i64: 3, 32>}, {pipeline_mode = #tpu.pipeline_mode<synchronous>, transform_indices = @transform_14, window_bounds = array<i64: 3, 1>}, {transform_indices = @transform_15, window_bounds = array<i64: 3, 256>}]} {
    %c0 = arith.constant 0 : index
    %c0_0 = arith.constant 0 : index
    %0 = vector.load %arg1[%c0, %c0_0] : memref<3x256xf32, #tpu.memory_space<vmem>>, vector<3x256xf32>
    %c0_1 = arith.constant 0 : index
    %c0_2 = arith.constant 0 : index
    %1 = vector.load %arg2[%c0_1, %c0_2] : memref<1x256xf32, #tpu.memory_space<vmem>>, vector<1x256xf32>
    %c0_3 = arith.constant 0 : index
    %c0_4 = arith.constant 0 : index
    %2 = vector.load %arg3[%c0_3, %c0_4] : memref<3x1xf32, #tpu.memory_space<vmem>>, vector<3x1xf32>
    %3 = vector.broadcast %2 : vector<3x1xf32> to vector<3x256xf32>
    %4 = vector.broadcast %1 : vector<1x256xf32> to vector<3x256xf32>
    %5 = arith.mulf %3, %4 : vector<3x256xf32>
    %c0_5 = arith.constant 0 : index
    %c0_6 = arith.constant 0 : index
    %6 = vector.load %arg4[%c0_5, %c0_6] : memref<3x1xf32, #tpu.memory_space<vmem>>, vector<3x1xf32>
    %7 = vector.broadcast %6 : vector<3x1xf32> to vector<3x256xf32>
    %8 = arith.addf %5, %7 : vector<3x256xf32>
    %cst = arith.constant 0.000000e+00 : f32
    %9 = vector.broadcast %cst : f32 to vector<3x256xf32>
    %10 = arith.maximumf %8, %9 : vector<3x256xf32>
    %c0_7 = arith.constant 0 : index
    %c0_8 = arith.constant 0 : index
    %11 = vector.load %arg5[%c0_7, %c0_8] : memref<3x3xf32, #tpu.memory_space<vmem>>, vector<3x3xf32>
    %c0_9 = arith.constant 0 : index
    %c0_10 = arith.constant 0 : index
    %12 = vector.load %arg6[%c0_9, %c0_10] : memref<3x1xf32, #tpu.memory_space<vmem>>, vector<3x1xf32>
    %13 = vector.extract_strided_slice %11 {offsets = [0, 0], sizes = [3, 1], strides = [1, 1]} : vector<3x3xf32> to vector<3x1xf32>
    %14 = vector.extract_strided_slice %10 {offsets = [0, 0], sizes = [1, 256], strides = [1, 1]} : vector<3x256xf32> to vector<1x256xf32>
    %15 = vector.broadcast %13 : vector<3x1xf32> to vector<3x256xf32>
    %16 = vector.broadcast %14 : vector<1x256xf32> to vector<3x256xf32>
    %17 = arith.mulf %15, %16 : vector<3x256xf32>
    %18 = vector.broadcast %12 : vector<3x1xf32> to vector<3x256xf32>
    %19 = arith.addf %18, %17 : vector<3x256xf32>
    %20 = vector.extract_strided_slice %11 {offsets = [0, 1], sizes = [3, 1], strides = [1, 1]} : vector<3x3xf32> to vector<3x1xf32>
    %21 = vector.extract_strided_slice %10 {offsets = [1, 0], sizes = [1, 256], strides = [1, 1]} : vector<3x256xf32> to vector<1x256xf32>
    %22 = vector.broadcast %20 : vector<3x1xf32> to vector<3x256xf32>
    %23 = vector.broadcast %21 : vector<1x256xf32> to vector<3x256xf32>
    %24 = arith.mulf %22, %23 : vector<3x256xf32>
    %25 = arith.addf %19, %24 : vector<3x256xf32>
    %26 = vector.extract_strided_slice %11 {offsets = [0, 2], sizes = [3, 1], strides = [1, 1]} : vector<3x3xf32> to vector<3x1xf32>
    %27 = vector.extract_strided_slice %10 {offsets = [2, 0], sizes = [1, 256], strides = [1, 1]} : vector<3x256xf32> to vector<1x256xf32>
    %28 = vector.broadcast %26 : vector<3x1xf32> to vector<3x256xf32>
    %29 = vector.broadcast %27 : vector<1x256xf32> to vector<3x256xf32>
    %30 = arith.mulf %28, %29 : vector<3x256xf32>
    %31 = arith.addf %25, %30 : vector<3x256xf32>
    %c0_11 = arith.constant 0 : index
    %c0_12 = arith.constant 0 : index
    %32 = vector.load %arg7[%c0_11, %c0_12] : memref<32x3xf32, #tpu.memory_space<vmem>>, vector<32x3xf32>
    %c0_13 = arith.constant 0 : index
    %c0_14 = arith.constant 0 : index
    %33 = vector.load %arg8[%c0_13, %c0_14] : memref<32x3xf32, #tpu.memory_space<vmem>>, vector<32x3xf32>
    %c0_15 = arith.constant 0 : index
    %c0_16 = arith.constant 0 : index
    %34 = vector.load %arg9[%c0_15, %c0_16] : memref<32x1xf32, #tpu.memory_space<vmem>>, vector<32x1xf32>
    %35 = vector.extract_strided_slice %32 {offsets = [0, 0], sizes = [32, 1], strides = [1, 1]} : vector<32x3xf32> to vector<32x1xf32>
    %36 = vector.extract_strided_slice %0 {offsets = [0, 0], sizes = [1, 256], strides = [1, 1]} : vector<3x256xf32> to vector<1x256xf32>
    %37 = vector.broadcast %35 : vector<32x1xf32> to vector<32x256xf32>
    %38 = vector.broadcast %36 : vector<1x256xf32> to vector<32x256xf32>
    %39 = arith.mulf %37, %38 : vector<32x256xf32>
    %40 = vector.broadcast %34 : vector<32x1xf32> to vector<32x256xf32>
    %41 = arith.addf %40, %39 : vector<32x256xf32>
    %42 = vector.extract_strided_slice %32 {offsets = [0, 1], sizes = [32, 1], strides = [1, 1]} : vector<32x3xf32> to vector<32x1xf32>
    %43 = vector.extract_strided_slice %0 {offsets = [1, 0], sizes = [1, 256], strides = [1, 1]} : vector<3x256xf32> to vector<1x256xf32>
    %44 = vector.broadcast %42 : vector<32x1xf32> to vector<32x256xf32>
    %45 = vector.broadcast %43 : vector<1x256xf32> to vector<32x256xf32>
    %46 = arith.mulf %44, %45 : vector<32x256xf32>
    %47 = arith.addf %41, %46 : vector<32x256xf32>
    %48 = vector.extract_strided_slice %32 {offsets = [0, 2], sizes = [32, 1], strides = [1, 1]} : vector<32x3xf32> to vector<32x1xf32>
    %49 = vector.extract_strided_slice %0 {offsets = [2, 0], sizes = [1, 256], strides = [1, 1]} : vector<3x256xf32> to vector<1x256xf32>
    %50 = vector.broadcast %48 : vector<32x1xf32> to vector<32x256xf32>
    %51 = vector.broadcast %49 : vector<1x256xf32> to vector<32x256xf32>
    %52 = arith.mulf %50, %51 : vector<32x256xf32>
    %53 = arith.addf %47, %52 : vector<32x256xf32>
    %54 = vector.extract_strided_slice %33 {offsets = [0, 0], sizes = [32, 1], strides = [1, 1]} : vector<32x3xf32> to vector<32x1xf32>
    %55 = vector.extract_strided_slice %31 {offsets = [0, 0], sizes = [1, 256], strides = [1, 1]} : vector<3x256xf32> to vector<1x256xf32>
    %56 = vector.broadcast %54 : vector<32x1xf32> to vector<32x256xf32>
    %57 = vector.broadcast %55 : vector<1x256xf32> to vector<32x256xf32>
    %58 = arith.mulf %56, %57 : vector<32x256xf32>
    %59 = arith.addf %53, %58 : vector<32x256xf32>
    %60 = vector.extract_strided_slice %33 {offsets = [0, 1], sizes = [32, 1], strides = [1, 1]} : vector<32x3xf32> to vector<32x1xf32>
    %61 = vector.extract_strided_slice %31 {offsets = [1, 0], sizes = [1, 256], strides = [1, 1]} : vector<3x256xf32> to vector<1x256xf32>
    %62 = vector.broadcast %60 : vector<32x1xf32> to vector<32x256xf32>
    %63 = vector.broadcast %61 : vector<1x256xf32> to vector<32x256xf32>
    %64 = arith.mulf %62, %63 : vector<32x256xf32>
    %65 = arith.addf %59, %64 : vector<32x256xf32>
    %66 = vector.extract_strided_slice %33 {offsets = [0, 2], sizes = [32, 1], strides = [1, 1]} : vector<32x3xf32> to vector<32x1xf32>
    %67 = vector.extract_strided_slice %31 {offsets = [2, 0], sizes = [1, 256], strides = [1, 1]} : vector<3x256xf32> to vector<1x256xf32>
    %68 = vector.broadcast %66 : vector<32x1xf32> to vector<32x256xf32>
    %69 = vector.broadcast %67 : vector<1x256xf32> to vector<32x256xf32>
    %70 = arith.mulf %68, %69 : vector<32x256xf32>
    %71 = arith.addf %65, %70 : vector<32x256xf32>
    %cst_17 = arith.constant 0.000000e+00 : f32
    %72 = vector.broadcast %cst_17 : f32 to vector<32x256xf32>
    %73 = arith.maximumf %71, %72 : vector<32x256xf32>
    %c0_18 = arith.constant 0 : index
    %c0_19 = arith.constant 0 : index
    %c0_20 = arith.constant 0 : index
    %74 = vector.load %arg10[%c0_18, %c0_19, %c0_20] : memref<2x32x32xf32, #tpu.memory_space<vmem>>, vector<1x32x32xf32>
    %75 = vector.shape_cast %74 : vector<1x32x32xf32> to vector<32x32xf32>
    %cst_21 = arith.constant dense<0.000000e+00> : vector<32x256xf32>
    %76 = tpu.matmul %75, %73, %cst_21 {dimension_numbers = #tpu.dot_dimension_numbers<[1], [0], [0], [1], [0, 0, 1, 1], [], []>} : vector<32x32xf32>, vector<32x256xf32>, vector<32x256xf32> -> vector<32x256xf32>
    %c0_22 = arith.constant 0 : index
    %c0_23 = arith.constant 0 : index
    %c0_24 = arith.constant 0 : index
    %77 = vector.load %arg11[%c0_22, %c0_23, %c0_24] : memref<2x32x1xf32, #tpu.memory_space<vmem>>, vector<1x32x1xf32>
    %78 = vector.shape_cast %77 : vector<1x32x1xf32> to vector<32x1xf32>
    %79 = vector.broadcast %78 : vector<32x1xf32> to vector<32x256xf32>
    %80 = arith.addf %76, %79 : vector<32x256xf32>
    %cst_25 = arith.constant 0.000000e+00 : f32
    %81 = vector.broadcast %cst_25 : f32 to vector<32x256xf32>
    %82 = arith.maximumf %80, %81 : vector<32x256xf32>
    %c0_26 = arith.constant 0 : index
    %c0_27 = arith.constant 0 : index
    %c0_28 = arith.constant 0 : index
    %83 = vector.load %arg12[%c0_26, %c0_27, %c0_28] : memref<2x32x32xf32, #tpu.memory_space<vmem>>, vector<1x32x32xf32>
    %84 = vector.shape_cast %83 : vector<1x32x32xf32> to vector<32x32xf32>
    %cst_29 = arith.constant dense<0.000000e+00> : vector<32x256xf32>
    %85 = tpu.matmul %84, %82, %cst_29 {dimension_numbers = #tpu.dot_dimension_numbers<[1], [0], [0], [1], [0, 0, 1, 1], [], []>} : vector<32x32xf32>, vector<32x256xf32>, vector<32x256xf32> -> vector<32x256xf32>
    %c0_30 = arith.constant 0 : index
    %c0_31 = arith.constant 0 : index
    %c0_32 = arith.constant 0 : index
    %86 = vector.load %arg13[%c0_30, %c0_31, %c0_32] : memref<2x32x1xf32, #tpu.memory_space<vmem>>, vector<1x32x1xf32>
    %87 = vector.shape_cast %86 : vector<1x32x1xf32> to vector<32x1xf32>
    %88 = vector.broadcast %87 : vector<32x1xf32> to vector<32x256xf32>
    %89 = arith.addf %85, %88 : vector<32x256xf32>
    %90 = arith.addf %73, %89 : vector<32x256xf32>
    %cst_33 = arith.constant 0.000000e+00 : f32
    %91 = vector.broadcast %cst_33 : f32 to vector<32x256xf32>
    %92 = arith.maximumf %90, %91 : vector<32x256xf32>
    %c1 = arith.constant 1 : index
    %c0_34 = arith.constant 0 : index
    %c0_35 = arith.constant 0 : index
    %93 = vector.load %arg10[%c1, %c0_34, %c0_35] : memref<2x32x32xf32, #tpu.memory_space<vmem>>, vector<1x32x32xf32>
    %94 = vector.shape_cast %93 : vector<1x32x32xf32> to vector<32x32xf32>
    %cst_36 = arith.constant dense<0.000000e+00> : vector<32x256xf32>
    %95 = tpu.matmul %94, %92, %cst_36 {dimension_numbers = #tpu.dot_dimension_numbers<[1], [0], [0], [1], [0, 0, 1, 1], [], []>} : vector<32x32xf32>, vector<32x256xf32>, vector<32x256xf32> -> vector<32x256xf32>
    %c1_37 = arith.constant 1 : index
    %c0_38 = arith.constant 0 : index
    %c0_39 = arith.constant 0 : index
    %96 = vector.load %arg11[%c1_37, %c0_38, %c0_39] : memref<2x32x1xf32, #tpu.memory_space<vmem>>, vector<1x32x1xf32>
    %97 = vector.shape_cast %96 : vector<1x32x1xf32> to vector<32x1xf32>
    %98 = vector.broadcast %97 : vector<32x1xf32> to vector<32x256xf32>
    %99 = arith.addf %95, %98 : vector<32x256xf32>
    %cst_40 = arith.constant 0.000000e+00 : f32
    %100 = vector.broadcast %cst_40 : f32 to vector<32x256xf32>
    %101 = arith.maximumf %99, %100 : vector<32x256xf32>
    %c1_41 = arith.constant 1 : index
    %c0_42 = arith.constant 0 : index
    %c0_43 = arith.constant 0 : index
    %102 = vector.load %arg12[%c1_41, %c0_42, %c0_43] : memref<2x32x32xf32, #tpu.memory_space<vmem>>, vector<1x32x32xf32>
    %103 = vector.shape_cast %102 : vector<1x32x32xf32> to vector<32x32xf32>
    %cst_44 = arith.constant dense<0.000000e+00> : vector<32x256xf32>
    %104 = tpu.matmul %103, %101, %cst_44 {dimension_numbers = #tpu.dot_dimension_numbers<[1], [0], [0], [1], [0, 0, 1, 1], [], []>} : vector<32x32xf32>, vector<32x256xf32>, vector<32x256xf32> -> vector<32x256xf32>
    %c1_45 = arith.constant 1 : index
    %c0_46 = arith.constant 0 : index
    %c0_47 = arith.constant 0 : index
    %105 = vector.load %arg13[%c1_45, %c0_46, %c0_47] : memref<2x32x1xf32, #tpu.memory_space<vmem>>, vector<1x32x1xf32>
    %106 = vector.shape_cast %105 : vector<1x32x1xf32> to vector<32x1xf32>
    %107 = vector.broadcast %106 : vector<32x1xf32> to vector<32x256xf32>
    %108 = arith.addf %104, %107 : vector<32x256xf32>
    %109 = arith.addf %92, %108 : vector<32x256xf32>
    %cst_48 = arith.constant 0.000000e+00 : f32
    %110 = vector.broadcast %cst_48 : f32 to vector<32x256xf32>
    %111 = arith.maximumf %109, %110 : vector<32x256xf32>
    %c0_49 = arith.constant 0 : index
    %c0_50 = arith.constant 0 : index
    %112 = vector.load %arg14[%c0_49, %c0_50] : memref<3x32xf32, #tpu.memory_space<vmem>>, vector<3x32xf32>
    %cst_51 = arith.constant dense<0.000000e+00> : vector<3x256xf32>
    %113 = tpu.matmul %112, %111, %cst_51 {dimension_numbers = #tpu.dot_dimension_numbers<[1], [0], [0], [1], [0, 0, 1, 1], [], []>} : vector<3x32xf32>, vector<32x256xf32>, vector<3x256xf32> -> vector<3x256xf32>
    %c0_52 = arith.constant 0 : index
    %c0_53 = arith.constant 0 : index
    %114 = vector.load %arg15[%c0_52, %c0_53] : memref<3x1xf32, #tpu.memory_space<vmem>>, vector<3x1xf32>
    %115 = vector.broadcast %114 : vector<3x1xf32> to vector<3x256xf32>
    %116 = arith.addf %113, %115 : vector<3x256xf32>
    %c0_54 = arith.constant 0 : index
    %c0_55 = arith.constant 0 : index
    %117 = vector.load %arg16[%c0_54, %c0_55] : memref<3x256xf32, #tpu.memory_space<vmem>>, vector<3x256xf32>
    tpu.vector_store %arg16[%c0_54, %c0_55], %116 {strides = array<i32>} : memref<3x256xf32, #tpu.memory_space<vmem>>, vector<3x256xf32>,
    return
  }
  func.func @transform_0(%arg0: i32) -> (i32, i32) {
    %c0_i32 = arith.constant 0 : i32
    %c0_i32_0 = arith.constant 0 : i32
    return %c0_i32, %arg0 : i32, i32
  }
  func.func @transform_1(%arg0: i32) -> (i32, i32) {
    %c0_i32 = arith.constant 0 : i32
    %c0_i32_0 = arith.constant 0 : i32
    return %c0_i32, %arg0 : i32, i32
  }
  func.func @transform_2(%arg0: i32) -> (i32, i32) {
    %c0_i32 = arith.constant 0 : i32
    %c0_i32_0 = arith.constant 0 : i32
    %c0_i32_1 = arith.constant 0 : i32
    return %c0_i32, %c0_i32_0 : i32, i32
  }
  func.func @transform_3(%arg0: i32) -> (i32, i32) {
    %c0_i32 = arith.constant 0 : i32
    %c0_i32_0 = arith.constant 0 : i32
    %c0_i32_1 = arith.constant 0 : i32
    return %c0_i32, %c0_i32_0 : i32, i32
  }
  func.func @transform_4(%arg0: i32) -> (i32, i32) {
    %c0_i32 = arith.constant 0 : i32
    %c0_i32_0 = arith.constant 0 : i32
    %c0_i32_1 = arith.constant 0 : i32
    return %c0_i32, %c0_i32_0 : i32, i32
  }
  func.func @transform_5(%arg0: i32) -> (i32, i32) {
    %c0_i32 = arith.constant 0 : i32
    %c0_i32_0 = arith.constant 0 : i32
    %c0_i32_1 = arith.constant 0 : i32
    return %c0_i32, %c0_i32_0 : i32, i32
  }
  func.func @transform_6(%arg0: i32) -> (i32, i32) {
    %c0_i32 = arith.constant 0 : i32
    %c0_i32_0 = arith.constant 0 : i32
    %c0_i32_1 = arith.constant 0 : i32
    return %c0_i32, %c0_i32_0 : i32, i32
  }
  func.func @transform_7(%arg0: i32) -> (i32, i32) {
    %c0_i32 = arith.constant 0 : i32
    %c0_i32_0 = arith.constant 0 : i32
    %c0_i32_1 = arith.constant 0 : i32
    return %c0_i32, %c0_i32_0 : i32, i32
  }
  func.func @transform_8(%arg0: i32) -> (i32, i32) {
    %c0_i32 = arith.constant 0 : i32
    %c0_i32_0 = arith.constant 0 : i32
    %c0_i32_1 = arith.constant 0 : i32
    return %c0_i32, %c0_i32_0 : i32, i32
  }
  func.func @transform_9(%arg0: i32) -> (i32, i32, i32) {
    %c0_i32 = arith.constant 0 : i32
    %c0_i32_0 = arith.constant 0 : i32
    %c0_i32_1 = arith.constant 0 : i32
    %c0_i32_2 = arith.constant 0 : i32
    return %c0_i32, %c0_i32_0, %c0_i32_1 : i32, i32, i32
  }
  func.func @transform_10(%arg0: i32) -> (i32, i32, i32) {
    %c0_i32 = arith.constant 0 : i32
    %c0_i32_0 = arith.constant 0 : i32
    %c0_i32_1 = arith.constant 0 : i32
    %c0_i32_2 = arith.constant 0 : i32
    return %c0_i32, %c0_i32_0, %c0_i32_1 : i32, i32, i32
  }
  func.func @transform_11(%arg0: i32) -> (i32, i32, i32) {
    %c0_i32 = arith.constant 0 : i32
    %c0_i32_0 = arith.constant 0 : i32
    %c0_i32_1 = arith.constant 0 : i32
    %c0_i32_2 = arith.constant 0 : i32
    return %c0_i32, %c0_i32_0, %c0_i32_1 : i32, i32, i32
  }
  func.func @transform_12(%arg0: i32) -> (i32, i32, i32) {
    %c0_i32 = arith.constant 0 : i32
    %c0_i32_0 = arith.constant 0 : i32
    %c0_i32_1 = arith.constant 0 : i32
    %c0_i32_2 = arith.constant 0 : i32
    return %c0_i32, %c0_i32_0, %c0_i32_1 : i32, i32, i32
  }
  func.func @transform_13(%arg0: i32) -> (i32, i32) {
    %c0_i32 = arith.constant 0 : i32
    %c0_i32_0 = arith.constant 0 : i32
    %c0_i32_1 = arith.constant 0 : i32
    return %c0_i32, %c0_i32_0 : i32, i32
  }
  func.func @transform_14(%arg0: i32) -> (i32, i32) {
    %c0_i32 = arith.constant 0 : i32
    %c0_i32_0 = arith.constant 0 : i32
    %c0_i32_1 = arith.constant 0 : i32
    return %c0_i32, %c0_i32_0 : i32, i32
  }
  func.func @transform_15(%arg0: i32) -> (i32, i32) {
    %c0_i32 = arith.constant 0 : i32
    %c0_i32_0 = arith.constant 0 : i32
    return %c0_i32, %arg0 : i32, i32
  }
}

</mosaic_0001>

<bundles_post_ra>
// kernel: ddpm_forward.1
= control target key start
LH: loop header
LB: loop body
LE: loop exit
PB: predicated region body
PF: predicated region fallthrough
CT: control target
= control target key end

     0   :  { %v1212_v0 = vmov 0   ;;  %v1213_v6 = vmov 2   ;;  %v1214_v14 = vmov 1   ;;  %v1215_v19 = vmov 0.0   ;;  %s1747_s4 = inlined_call_operand.vmem [shape: f32[3,3], index: 4, kind: input, shape index: {}]   ;;  %s1748_s2 = inlined_call_operand.vmem [shape: f32[3,1], index: 2, kind: input, shape index: {}]   ;;  %s1749_s5 = inlined_call_operand.vmem [shape: f32[3,1], index: 5, kind: input, shape index: {}]   ;;  %s1750_s3 = inlined_call_operand.vmem [shape: f32[3,1], index: 3, kind: input, shape index: {}]   ;;  %s1751_s6 = inlined_call_operand.vmem [shape: f32[32,3], index: 6, kind: input, shape index: {}]   ;;  %s1752_s8 = inlined_call_operand.vmem [shape: f32[32,1], index: 8, kind: input, shape index: {}]   ;;  %s1753_s7 = inlined_call_operand.vmem [shape: f32[32,3], index: 7, kind: input, shape index: {}]   ;;  %s1754_s10 = inlined_call_operand.vmem [shape: f32[2,32,1], index: 10, kind: input, shape index: {}]   ;;  %s1755_s12 = inlined_call_operand.vmem [shape: f32[2,32,1], index: 12, kind: input, shape index: {}]   ;;  %s1756_s14 = inlined_call_operand.vmem [shape: f32[3,1], index: 14, kind: input, shape index: {}]   ;;  %s1757_s1 = inlined_call_operand.vmem [shape: f32[1,256], index: 1, kind: input, shape index: {}]   ;;  %s1758_s0 = inlined_call_operand.vmem [shape: f32[3,256], index: 0, kind: input, shape index: {}]   ;;  %s1759_s9 = inlined_call_operand.vmem [shape: f32[2,32,32], index: 9, kind: input, shape index: {}]   ;;  %s1760_s11 = inlined_call_operand.vmem [shape: f32[2,32,32], index: 11, kind: input, shape index: {}]   ;;  %s1761_s13 = inlined_call_operand.vmem [shape: f32[3,32], index: 13, kind: input, shape index: {}]   ;;  %s1762_s15 = inlined_call_operand.vmem [shape: f32[3,256], index: 15, kind: output, shape index: {}]  }
   0x1   :  { %1193 = vset.pattern.permute.xlu1 %v1212_v0  ;;  %1192 = vset.pattern.permute.xlu0 %v1212_v0  ;;  %v81_v1 = vld [vmem:[%s1747_s4] sm:$0x7]  ;;  %v138_v5 = vld [vmem:[%s1751_s6 + $0x8] sm:$0xff]  ;;  %v140_v7 = vld [vmem:[%s1751_s6 + $0x18] sm:$0xff]  ;;  %v59_v44 = vlaneseq  ;;  %vm484_vm0 = vcmask 261120  }
   0x2   :  { %v52_v2 = vld [vmem:[%s1748_s2] sm:$0x7]  ;;  %85 = vperm.xlu1 %1193, %v81_v1   ;;  %v147_v9 = vld [vmem:[%s1752_s8 + $0x10] sm:$0xff]  ;;  %v142_v11 = vld [vmem:[%s1753_s7 + $0x8] sm:$0xff]  ;;  %561 = vmatprep.mubr.f32.mxu0 %v1215_v19 }
   0x3   :  { %55 = vperm.xlu0 %1192, %v52_v2   ;;  %v82_v3 = vld [vmem:[%s1749_s5] sm:$0x7]  ;;  %v146_v12 = vld [vmem:[%s1752_s8 + $0x8] sm:$0xff]  ;;  %v144_v13 = vld [vmem:[%s1753_s7 + $0x18] sm:$0xff]  ;;  %698 = vmatprep.mubr.f32.mxu1 %v1215_v19  ;;  %v60_v48 = vshrl.u32 %v59_v44, 7 }
   0x4   :  { %v71_v4 = vld [vmem:[%s1750_s3] sm:$0x7]  ;;  %v139_v15 = vld [vmem:[%s1751_s6 + $0x10] sm:$0xff]  ;;  %v148_v18 = vld [vmem:[%s1752_s8 + $0x18] sm:$0xff] }
   0x5   :  { %v137_v8 = vld [vmem:[%s1751_s6] sm:$0xff]  ;;  %v143_v17 = vld [vmem:[%s1753_s7 + $0x10] sm:$0xff]  ;;  %v461_v21 = vld [vmem:[%s1754_s10 + $0x8] sm:$0xff]  ;;  %v1424_v51 = vsub.s32 0, %v60_v48  ;;  %v1426_v52 = vsub.s32 1, %v60_v48 }
   0x6   :  { %100 = vperm.xlu1 %1193, %v82_v3   ;;  %v145_v10 = vld [vmem:[%s1752_s8] sm:$0xff]  ;;  %v462_v22 = vld [vmem:[%s1754_s10 + $0x10] sm:$0xff]  ;;  %v599_v23 = vld [vmem:[%s1755_s12 + $0x8] sm:$0xff] }
   0x7   :  { %74 = vperm.xlu0 %1192, %v71_v4   ;;  %v141_v16 = vld [vmem:[%s1753_s7] sm:$0xff]  ;;  %v463_v24 = vld [vmem:[%s1754_s10 + $0x18] sm:$0xff]  ;;  %v1128_v29 = vld [vmem:[%s1754_s10 + $0x28] sm:$0xff] }
   0x8   :  { %v460_v20 = vld [vmem:[%s1754_s10] sm:$0xff]  ;;  %v601_v26 = vld [vmem:[%s1755_s12 + $0x18] sm:$0xff]  ;;  %v600_v30 = vld [vmem:[%s1755_s12 + $0x10] sm:$0xff] }
   0x9   :  { %v598_v27 = vld [vmem:[%s1755_s12] sm:$0xff]  ;;  %v1130_v31 = vld [vmem:[%s1754_s10 + $0x38] sm:$0xff]  ;;  %v1140_v34 = vld [vmem:[%s1755_s12 + $0x28] sm:$0xff] }
   0xa   :  { %1194 = vset.pattern.permute.xlu1 %v1213_v6  ;;  %v1127_v33 = vld [vmem:[%s1754_s10 + $0x20] sm:$0xff]  ;;  %v1129_v36 = vld [vmem:[%s1754_s10 + $0x30] sm:$0xff]  ;;  %v1142_v38 = vld [vmem:[%s1755_s12 + $0x38] sm:$0xff] }
   0xb   :  { %156 = vperm.xlu0 %1192, %v138_v5   ;;  %122 = vperm.xlu1 %1194, %v81_v1   ;;  %v1139_v40 = vld [vmem:[%s1755_s12 + $0x20] sm:$0xff]  ;;  %v1141_v43 = vld [vmem:[%s1755_s12 + $0x30] sm:$0xff] }
   0xc   :  { %v1026_v45 = vld [vmem:[%s1756_s14] sm:$0x7] }
   0xd   :  { %v51_v53 = vld [vmem:[%s1757_s1] sm:$0x3] }
   0xe   :  { %v62_v55 = vrot.slane %v51_v53, %v1424_v51  ;;  %v66_v56 = vrot.slane %v51_v53, %v1426_v52 }
   0xf   :  { %166 = vperm.xlu0 %1192, %v140_v7   ;;  %1195 = vset.pattern.permute.xlu1 %v1212_v0 }
  0x10   :  { %151 = vperm.xlu1 %1195, %v137_v8  }
  0x13   :  { %208 = vperm.xlu0 %1192, %v147_v9   ;;  %v50_v9 = vld [vmem:[%s1758_s0] sm:$0x77] }
  0x14   :  { %198 = vperm.xlu1 %1195, %v145_v10  }
  0x17   :  { %331 = vperm.xlu0 %1192, %v142_v11  }
  0x18   :  { %203 = vperm.xlu1 %1195, %v146_v12  }
  0x1b   :  { %341 = vperm.xlu0 %1192, %v144_v13  }
  0x1c   :  { %1196 = vset.pattern.permute.xlu1 %v1214_v14 }
  0x1d   :  { %229 = vperm.xlu1 %1196, %v138_v5  }
  0x1f   :  { %1205 = vset.pattern.permute.xlu0 %v1214_v14 }
  0x20   :  { %106 = vperm.xlu0 %1205, %v81_v1  }
  0x21   :  { %1197 = vset.pattern.permute.xlu1 %v1212_v0 }
  0x22   :  { %161 = vperm.xlu1 %1197, %v139_v15  }
  0x24   :  { %225 = vperm.xlu0 %1205, %v137_v8  }
  0x26   :  { %1198 = vset.pattern.permute.xlu1 %v1213_v6 }
  0x27   :  { %275 = vperm.xlu1 %1198, %v137_v8   ;;  %v246_v8 = vsub.s32 5, %v60_v48 }
  0x28   :  { %233 = vperm.xlu0 %1205, %v139_v15  }
  0x2b   :  { %279 = vperm.xlu1 %1198, %v138_v5  }
  0x2c   :  { %369 = vperm.xlu0 %1205, %v141_v16  }
  0x2f   :  { %1199 = vset.pattern.permute.xlu1 %v1212_v0 }
  0x30   :  { %377 = vperm.xlu0 %1205, %v143_v17   ;;  %213 = vperm.xlu1 %1199, %v148_v18   ;;  %v173_v18 = vrot.slane %v50_v9, %v1424_v51 }
  0x34   :  { %1209 = vset.pattern.permute.xlu0 %v1213_v6  ;;  %1200 = vset.pattern.permute.xlu1 %v1214_v14 }
  0x35   :  { %421 = vperm.xlu0 %1209, %v144_v13   ;;  %237 = vperm.xlu1 %1200, %v140_v7  }
  0x39   :  { %1211 = vset.pattern.permute.xlu0 %v1212_v0  ;;  %1201 = vset.pattern.permute.xlu1 %v1212_v0 }
  0x3a   :  { %326 = vperm.xlu1 %1201, %v141_v16   ;;  %476 = vperm.xlu0 %1211, %v462_v22   ;;  %v247_v22 = vrot.slane %v50_v9, %v246_v8 }
  0x3e   :  { %1202 = vset.pattern.permute.xlu1 %v1213_v6  ;;  %609 = vperm.xlu0 %1211, %v599_v23  }
  0x3f   :  { %283 = vperm.xlu1 %1202, %v139_v15   ;;  %v1456_v15 = vsub.s32 2, %v60_v48 }
  0x42   :  { %619 = vperm.xlu0 %1211, %v601_v26   ;;  %v293_v26 = vrot.slane %v50_v9, %v1456_v15 }
  0x43   :  { %287 = vperm.xlu1 %1202, %v140_v7   ;;  %v176_v7 = vsub.s32 4, %v60_v48 }
  0x46   :  { %756 = vperm.xlu0 %1211, %v1128_v29  }
  0x47   :  { %1203 = vset.pattern.permute.xlu1 %v1214_v14 }
  0x48   :  { %373 = vperm.xlu1 %1203, %v142_v11  }
  0x4a   :  { %766 = vperm.xlu0 %1211, %v1130_v31  }
  0x4c   :  { %1204 = vset.pattern.permute.xlu1 %v1212_v0 }
  0x4d   :  { %336 = vperm.xlu1 %1204, %v143_v17  }
  0x4e   :  { %895 = vperm.xlu0 %1211, %v1140_v34   ;;  %v183_v34 = vrot.slane %v173_v18, %v1424_v51 }
  0x51   :  { %1206 = vset.pattern.permute.xlu1 %v1213_v6 }
  0x52   :  { %409 = vperm.xlu1 %1206, %v141_v16   ;;  %905 = vperm.xlu0 %1211, %v1142_v38   ;;  %v257_v38 = vrot.slane %v247_v22, %v1426_v52 }
  0x56   :  { %413 = vperm.xlu1 %1206, %v142_v11  }
  0x5a   :  { %1207 = vset.pattern.permute.xlu1 %v1214_v14  ;;  %v296_v14 = vsub.s32 6, %v60_v48 }
  0x5b   :  { %381 = vperm.xlu1 %1207, %v144_v13  }
  0x5f   :  { %1208 = vset.pattern.permute.xlu1 %v1213_v6 }
  0x60   :  { %417 = vperm.xlu1 %1208, %v143_v17  }
  0x64   :  { %1210 = vset.pattern.permute.xlu1 %v1212_v0 }
  0x65   :  { %466 = vperm.xlu1 %1210, %v460_v20   ;;  %v177_v20 = vrot.slane %v50_v9, %v176_v7 }
  0x69   :  { %471 = vperm.xlu1 %1210, %v461_v21   ;;  %v243_v21 = vrot.slane %v50_v9, %v1426_v52 }
  0x6d   :  { %481 = vperm.xlu1 %1210, %v463_v24  }
  0x71   :  { %604 = vperm.xlu1 %1210, %v598_v27   ;;  %v297_v27 = vrot.slane %v50_v9, %v296_v14 }
  0x75   :  { %614 = vperm.xlu1 %1210, %v600_v30  }
  0x79   :  { %751 = vperm.xlu1 %1210, %v1127_v33  }
  0x7d   :  { %761 = vperm.xlu1 %1210, %v1129_v36   ;;  %v187_v36 = vrot.slane %v177_v20, %v1424_v51 }
  0x81   :  { %v1370_v25 = vpop.permute.xlu1 %85  ;;  %890 = vperm.xlu1 %1210, %v1139_v40  }
  0x82   :  { %v56_v37 = vpop.permute.xlu0 %55 }
  0x83   :  { %v69_v59 = vmul.f32 %v62_v55, %v56_v37  ;;  %v70_v60 = vmul.f32 %v66_v56, %v56_v37  ;;  %v253_v37 = vrot.slane %v243_v21, %v1426_v52  ;;  %v1479_v56 = vrot.slane %v297_v27, %v1456_v15 }
  0x85   :  { %v1378_v28 = vpop.permute.xlu1 %100  ;;  %900 = vperm.xlu1 %1210, %v1141_v43  }
  0x86   :  { %v75_v41 = vpop.permute.xlu0 %74 }
  0x87   :  { %v77_v62 = vadd.f32 %v75_v41, %v69_v59  ;;  %v78_v63 = vadd.f32 %v75_v41, %v70_v60 }
  0x89   :  { %1029 = vperm.xlu1 %1210, %v1026_v45   ;;  %v79_v1 = vmax.f32 %v77_v62, 0.0  ;;  %v80_v2 = vmax.f32 %v78_v63, 0.0 }
  0x8a   :  { %v1389_v32 = vpop.permute.xlu1 %122  ;;  %v157_v46 = vpop.permute.xlu0 %156 }
  0x8b   :  { %v91_v5 = vrot.slane %v79_v1, %v1424_v51  ;;  %v95_v6 = vrot.slane %v80_v2, %v1424_v51  ;;  %v112_v10 = vrot.slane %v79_v1, %v1426_v52  ;;  %v116_v11 = vrot.slane %v80_v2, %v1426_v52 }
  0x8c   :  { %v128_v30 = vrot.slane %v79_v1, %v1456_v15  ;;  %v132_v31 = vrot.slane %v80_v2, %v1456_v15  ;;  %v190_v43 = vmul.f32 %v183_v34, %v157_v46  ;;  %v191_v44 = vmul.f32 %v187_v36, %v157_v46 }
  0x8d   :  { %v96_v16 = vmul.f32 %v91_v5, %v1370_v25  ;;  %v97_v17 = vmul.f32 %v95_v6, %v1370_v25 }
  0x8e   :  { %v1422_v50 = vpop.permute.xlu0 %166  ;;  %v133_v48 = vmul.f32 %v128_v30, %v1389_v32  ;;  %v134_v53 = vmul.f32 %v132_v31, %v1389_v32 }
  0x8f   :  { %v1397_v35 = vpop.permute.xlu1 %151  ;;  %v103_v33 = vadd.f32 %v1378_v28, %v96_v16  ;;  %v104_v25 = vadd.f32 %v1378_v28, %v97_v17  ;;  %v1476_v28 = vrot.slane %v293_v26, %v1456_v15  ;;  %v194_v9 = vmul.f32 %v183_v34, %v1422_v50 }
  0x90   :  { %v188_v59 = vmul.f32 %v183_v34, %v1397_v35  ;;  %v189_v60 = vmul.f32 %v187_v36, %v1397_v35  ;;  %v195_v35 = vmul.f32 %v187_v36, %v1422_v50 }
  0x92   :  { %v1435_v57 = vpop.permute.xlu0 %208 }
  0x93   :  { %v1405_v39 = vpop.permute.xlu1 %198 }
  0x96   :  { %v1439_v61 = vpop.permute.xlu0 %331 }
  0x97   :  { %v1410_v42 = vpop.permute.xlu1 %203 }
  0x98   :  { %v218_v5 = vadd.f32 %v1410_v42, %v190_v43  ;;  %v219_v6 = vadd.f32 %v1410_v42, %v191_v44 }
  0x9a   :  { %v1443_v3 = vpop.permute.xlu0 %341 }
  0x9c   :  { %v1418_v47 = vpop.permute.xlu1 %229 }
  0x9d   :  { %v260_v62 = vmul.f32 %v253_v37, %v1418_v47  ;;  %v261_v46 = vmul.f32 %v257_v38, %v1418_v47  ;;  %v217_v47 = vadd.f32 %v1405_v39, %v189_v60 }
  0x9f   :  { %v107_v13 = vpop.permute.xlu0 %106  ;;  %v269_v14 = vadd.f32 %v261_v46, %v219_v6 }
  0xa0   :  { %v117_v23 = vmul.f32 %v112_v10, %v107_v13  ;;  %v118_v24 = vmul.f32 %v116_v11, %v107_v13  ;;  %v216_v11 = vadd.f32 %v1405_v39, %v188_v59  ;;  %v268_v13 = vadd.f32 %v260_v62, %v218_v5 }
  0xa1   :  { %v1420_v49 = vpop.permute.xlu1 %161 }
  0xa2   :  { %v119_v40 = vadd.f32 %v117_v23, %v103_v33  ;;  %v120_v41 = vadd.f32 %v118_v24, %v104_v25  ;;  %v192_v2 = vmul.f32 %v183_v34, %v1420_v49  ;;  %v193_v32 = vmul.f32 %v187_v36, %v1420_v49 }
  0xa3   :  { %v226_v55 = vpop.permute.xlu0 %225 }
  0xa4   :  { %v135_v63 = vadd.f32 %v133_v48, %v119_v40  ;;  %v136_v1 = vadd.f32 %v134_v53, %v120_v41  ;;  %v258_v7 = vmul.f32 %v253_v37, %v226_v55  ;;  %v259_v8 = vmul.f32 %v257_v38, %v226_v55 }
  0xa5   :  { %v220_v16 = vadd.f32 %v1435_v57, %v192_v2  ;;  %v221_v49 = vadd.f32 %v1435_v57, %v193_v32 }
  0xa6   :  { %v1431_v54 = vpop.permute.xlu1 %275  ;;  %v347_v42 = vrot.slane %v135_v63, %v1424_v51  ;;  %v351_v18 = vrot.slane %v136_v1, %v1424_v51  ;;  %v266_v20 = vadd.f32 %v258_v7, %v216_v11  ;;  %v267_v21 = vadd.f32 %v259_v8, %v217_v47 }
  0xa7   :  { %v234_v17 = vpop.permute.xlu0 %233  ;;  %v308_v50 = vmul.f32 %v1476_v28, %v1431_v54  ;;  %v309_v22 = vmul.f32 %v1479_v56, %v1431_v54  ;;  %v1506_v57 = vrot.slane %v135_v63, %v1426_v52  ;;  %v1509_v24 = vrot.slane %v136_v1, %v1426_v52 }
  0xa8   :  { %v1512_v51 = vrot.slane %v135_v63, %v1456_v15  ;;  %v1515_v26 = vrot.slane %v136_v1, %v1456_v15  ;;  %v262_v31 = vmul.f32 %v253_v37, %v234_v17  ;;  %v263_v33 = vmul.f32 %v257_v38, %v234_v17 }
  0xa9   :  { %v355_v25 = vmul.f32 %v351_v18, %v1439_v61  ;;  %v316_v34 = vadd.f32 %v308_v50, %v266_v20  ;;  %v317_v52 = vadd.f32 %v309_v22, %v267_v21  ;;  %v358_v36 = vmul.f32 %v347_v42, %v1443_v3 }
  0xaa   :  { %v1437_v58 = vpop.permute.xlu1 %279  ;;  %v359_v40 = vmul.f32 %v351_v18, %v1443_v3  ;;  %v271_v21 = vadd.f32 %v263_v33, %v221_v49 }
  0xab   :  { %v310_v39 = vmul.f32 %v1476_v28, %v1437_v58  ;;  %v311_v23 = vmul.f32 %v1479_v56, %v1437_v58  ;;  %v354_v58 = vmul.f32 %v347_v42, %v1439_v61  ;;  %v370_v43 = vpop.permute.xlu0 %369 }
  0xac   :  { %v392_v63 = vmul.f32 %v1506_v57, %v370_v43 }
  0xad   :  { %v318_v41 = vadd.f32 %v310_v39, %v268_v13  ;;  %v319_v15 = vadd.f32 %v311_v23, %v269_v14 }
  0xaf   :  { %v1441_v0 = vpop.permute.xlu1 %213  ;;  %v362_v2 = vadd.f32 %v354_v58, %v318_v41  ;;  %v363_v32 = vadd.f32 %v355_v25, %v319_v15  ;;  %v378_v8 = vpop.permute.xlu0 %377 }
  0xb0   :  { %v222_v48 = vadd.f32 %v1441_v0, %v194_v9  ;;  %v223_v53 = vadd.f32 %v1441_v0, %v195_v35  ;;  %v397_v41 = vmul.f32 %v1509_v24, %v378_v8 }
  0xb4   :  { %v1445_v4 = vpop.permute.xlu1 %237  ;;  %v422_v49 = vpop.permute.xlu0 %421 }
  0xb5   :  { %v264_v44 = vmul.f32 %v253_v37, %v1445_v4  ;;  %v393_v37 = vmul.f32 %v1509_v24, %v370_v43 }
  0xb7   :  { %v272_v0 = vadd.f32 %v264_v44, %v222_v48  ;;  %v438_v44 = vmul.f32 %v1512_v51, %v422_v49 }
  0xb9   :  { %v1454_v12 = vpop.permute.xlu1 %326 }
  0xba   :  { %v352_v54 = vmul.f32 %v347_v42, %v1454_v12  ;;  %v353_v27 = vmul.f32 %v351_v18, %v1454_v12  ;;  %v265_v12 = vmul.f32 %v257_v38, %v1445_v4 }
  0xbc   :  { %v360_v55 = vadd.f32 %v352_v54, %v316_v34  ;;  %v361_v59 = vadd.f32 %v353_v27, %v317_v52  ;;  %v273_v1 = vadd.f32 %v265_v12, %v223_v53  ;;  %v439_v12 = vmul.f32 %v1515_v26, %v422_v49 }
  0xbe   :  { %v1463_v29 = vpop.permute.xlu1 %283  ;;  %v400_v6 = vadd.f32 %v392_v63, %v360_v55  ;;  %v401_v7 = vadd.f32 %v393_v37, %v361_v59 }
  0xbf   :  { %v313_v5 = vmul.f32 %v1479_v56, %v1463_v29 }
  0xc1   :  { %v321_v23 = vadd.f32 %v313_v5, %v271_v21 }
  0xc2   :  { %v288_v45 = vpop.permute.xlu1 %287 }
  0xc3   :  { %v314_v61 = vmul.f32 %v1476_v28, %v288_v45  ;;  %v315_v60 = vmul.f32 %v1479_v56, %v288_v45  ;;  %v312_v45 = vmul.f32 %v1476_v28, %v1463_v29  ;;  %v270_v28 = vadd.f32 %v262_v31, %v220_v16 }
  0xc5   :  { %v322_v9 = vadd.f32 %v314_v61, %v272_v0  ;;  %v323_v35 = vadd.f32 %v315_v60, %v273_v1  ;;  %v320_v39 = vadd.f32 %v312_v45, %v270_v28  ;;  %v458_v0 = vld [vmem:[%s1759_s9 + $0x10] sm:$0xff]  ;;  %v459_v1 = vld [vmem:[%s1759_s9 + $0x18] sm:$0xff] }
  0xc7   :  { %v374_v10 = vpop.permute.xlu1 %373  ;;  %v366_v54 = vadd.f32 %v358_v36, %v322_v9  ;;  %v367_v27 = vadd.f32 %v359_v40, %v323_v35  ;;  %v396_v40 = vmul.f32 %v1506_v57, %v378_v8 }
  0xc8   :  { %v394_v62 = vmul.f32 %v1506_v57, %v374_v10  ;;  %v395_v3 = vmul.f32 %v1509_v24, %v374_v10 }
  0xca   :  { %v402_v10 = vadd.f32 %v394_v62, %v362_v2  ;;  %v403_v11 = vadd.f32 %v395_v3, %v363_v32 }
  0xcc   :  { %v337_v30 = vpop.permute.xlu1 %336 }
  0xcd   :  { %v356_v50 = vmul.f32 %v347_v42, %v337_v30  ;;  %v357_v29 = vmul.f32 %v351_v18, %v337_v30 }
  0xcf   :  { %v364_v42 = vadd.f32 %v356_v50, %v320_v39  ;;  %v365_v18 = vadd.f32 %v357_v29, %v321_v23  ;;  %v477_v29 = vpop.permute.xlu0 %476 }
  0xd1   :  { %v410_v46 = vpop.permute.xlu1 %409  ;;  %v404_v53 = vadd.f32 %v396_v40, %v364_v42  ;;  %v405_v55 = vadd.f32 %v397_v41, %v365_v18 }
  0xd2   :  { %v432_v4 = vmul.f32 %v1512_v51, %v410_v46  ;;  %v433_v38 = vmul.f32 %v1515_v26, %v410_v46 }
  0xd4   :  { %v1539_v13 = vadd.f32 %v432_v4, %v400_v6  ;;  %v1543_v20 = vadd.f32 %v433_v38, %v401_v7  ;;  %v457_v38 = vld [vmem:[%s1759_s9 + $0x8] sm:$0xff] }
  0xd5   :  { %v414_v47 = vpop.permute.xlu1 %413 }
  0xd6   :  { %v434_v14 = vmul.f32 %v1512_v51, %v414_v47  ;;  %v435_v17 = vmul.f32 %v1515_v26, %v414_v47  ;;  %v449_v25 = vmax.f32 %v1543_v20, 0.0  ;;  %v448_v52 = vmax.f32 %v1539_v13, 0.0 }
  0xd8   :  { %v1545_v56 = vadd.f32 %v434_v14, %v402_v10  ;;  %v1547_v22 = vadd.f32 %v435_v17, %v403_v11 }
  0xda   :  { %v382_v58 = vpop.permute.xlu1 %381  ;;  %v451_v34 = vmax.f32 %v1547_v22, 0.0  ;;  %v450_v16 = vmax.f32 %v1545_v56, 0.0 }
  0xdb   :  { %v398_v30 = vmul.f32 %v1506_v57, %v382_v58  ;;  %v399_v31 = vmul.f32 %v1509_v24, %v382_v58 }
  0xdc   :  { %v1148_v33 = vpack.c.bf16 %v451_v34, %v449_v25  ;;  %v1150_v36 = vpack.c.bf16 %v450_v16, %v448_v52 }
  0xdd   :  { %v406_v15 = vadd.f32 %v398_v30, %v366_v54  ;;  %v407_v43 = vadd.f32 %v399_v31, %v367_v27 }
  0xde   :  { %1149 = vmatprep.subr.bf16.mxu0 %v1148_v33 }
  0xdf   :  { %v418_v48 = vpop.permute.xlu1 %417  ;;  %1151 = vmatpush1.bf16.msra.mxu0 %v1150_v36  ;;  %v1567_v59 = vadd.f32 %v438_v44, %v406_v15  ;;  %v1569_v61 = vadd.f32 %v439_v12, %v407_v43  ;;  %v594_v15 = vld [vmem:[%s1760_s11] sm:$0xff]  ;;  %v595_v43 = vld [vmem:[%s1760_s11 + $0x8] sm:$0xff]  ;;  %v596_v44 = vld [vmem:[%s1760_s11 + $0x10] sm:$0xff] }
  0xe0   :  { %v436_v60 = vmul.f32 %v1512_v51, %v418_v48  ;;  %v437_v57 = vmul.f32 %v1515_v26, %v418_v48  ;;  %v456_v26 = vld [vmem:[%s1759_s9] sm:$0xff]  ;;  %v597_v12 = vld [vmem:[%s1760_s11 + $0x18] sm:$0xff] }
  0xe1   :  { %v455_v63 = vmax.f32 %v1569_v61, 0.0  ;;  %v454_v37 = vmax.f32 %v1567_v59, 0.0 }
  0xe2   :  { %v1573_v24 = vadd.f32 %v436_v60, %v404_v53  ;;  %v1575_v62 = vadd.f32 %v437_v57, %v405_v55 }
  0xe4   :  { %v452_v3 = vmax.f32 %v1573_v24, 0.0  ;;  %v453_v46 = vmax.f32 %v1575_v62, 0.0  ;;  %v467_v2 = vpop.permute.xlu1 %466  ;;  %v1123_v24 = vld [vmem:[%s1759_s9 + $0x20] sm:$0xff] }
  0xe6   :  { %v1152_v4 = vpack.c.bf16 %v455_v63, %v453_v46  ;;  %v1154_v51 = vpack.c.bf16 %v454_v37, %v452_v3 }
  0xe8   :  { %1153 = vmatprep.subr.bf16.mxu0 %v1152_v4  ;;  %v472_v6 = vpop.permute.xlu1 %471  ;;  %v610_v4 = vpop.permute.xlu0 %609 }
  0xe9   :  { %1155 = vmatpush1.bf16.msra.mxu0 %v1154_v51 }
  0xec   :  { %1115 = vmatmul.mubr.msk.f32.vlgmr.msra.gmra.mrb[0].mxu0 %vm484_vm0, %v456_v26  ;;  %v482_v54 = vpop.permute.xlu1 %481  ;;  %v620_v56 = vpop.permute.xlu0 %619 }
  0xed   :  { %567 = vmatprep.mubr.f32.mxu0 %v1215_v19 }
  0xf0   :  { %1116 = vmatmul.mubr.msk.f32.gmra.mrb[2].mxu0 %vm484_vm0, %v457_v38  ;;  %v605_v53 = vpop.permute.xlu1 %604 }
  0xf1   :  { %573 = vmatprep.mubr.f32.mxu0 %v1215_v19 }
  0xf4   :  { %1117 = vmatmul.mubr.msk.f32.gmra.mrb[4].mxu0 %vm484_vm0, %v458_v0 }
  0xf5   :  { %579 = vmatprep.mubr.f32.mxu0 %v1215_v19 }
  0xf8   :  { %1118 = vmatmul.mubr.msk.f32.gmra.mrb[6].mxu0 %vm484_vm0, %v459_v1 }
  0xf9   :  { %845 = vmatprep.mubr.f32.mxu0 %v1215_v19 }
 0x1bf   :  { %v563_v32 = vpop.f32.mrb[0].mxu0 }
 0x1c0   :  { %v565_v45 = vpop.f32.mrb[1].mxu0  ;;  %v564_v5 = vadd.f32 %v563_v32, %v467_v2 }
 0x1c1   :  { %v566_v7 = vadd.f32 %v565_v45, %v467_v2 }
 0x1c2   :  { %v586_v11 = vmax.f32 %v564_v5, 0.0 }
 0x1c3   :  { %v569_v8 = vpop.f32.mrb[2].mxu0  ;;  %v587_v14 = vmax.f32 %v566_v7, 0.0 }
 0x1c4   :  { %v570_v9 = vadd.f32 %v569_v8, %v472_v6  ;;  %v571_v35 = vpop.f32.mrb[3].mxu0 }
 0x1c5   :  { %v572_v10 = vadd.f32 %v571_v35, %v472_v6  ;;  %v615_v6 = vpop.permute.xlu1 %614 }
 0x1c6   :  { %v588_v47 = vmax.f32 %v570_v9, 0.0 }
 0x1c7   :  { %v589_v17 = vmax.f32 %v572_v10, 0.0  ;;  %v575_v28 = vpop.f32.mrb[4].mxu0 }
 0x1c8   :  { %v577_v21 = vpop.f32.mrb[5].mxu0  ;;  %v1158_v50 = vpack.c.bf16 %v588_v47, %v586_v11  ;;  %v576_v23 = vadd.f32 %v575_v28, %v477_v29 }
 0x1c9   :  { %v1156_v39 = vpack.c.bf16 %v589_v17, %v587_v14  ;;  %v578_v27 = vadd.f32 %v577_v21, %v477_v29 }
 0x1ca   :  { %v590_v30 = vmax.f32 %v576_v23, 0.0  ;;  %v752_v23 = vpop.permute.xlu1 %751 }
 0x1cb   :  { %v581_v58 = vpop.f32.mrb[6].mxu0  ;;  %1157 = vmatprep.subr.bf16.mxu1 %v1156_v39  ;;  %v591_v33 = vmax.f32 %v578_v27, 0.0  ;;  %v757_v27 = vpop.permute.xlu0 %756 }
 0x1cc   :  { %v582_v49 = vadd.f32 %v581_v58, %v482_v54  ;;  %v583_v42 = vpop.f32.mrb[7].mxu0  ;;  %1159 = vmatpush1.bf16.msra.mxu1 %v1158_v50 }
 0x1cd   :  { %v584_v18 = vadd.f32 %v583_v42, %v482_v54 }
 0x1ce   :  { %v592_v31 = vmax.f32 %v582_v49, 0.0 }
 0x1cf   :  { %v593_v36 = vmax.f32 %v584_v18, 0.0 }
 0x1d0   :  { %v1162_v40 = vpack.c.bf16 %v592_v31, %v590_v30 }
 0x1d1   :  { %v1160_v41 = vpack.c.bf16 %v593_v36, %v591_v33 }
 0x1d3   :  { %1161 = vmatprep.subr.bf16.mxu1 %v1160_v41 }
 0x1d4   :  { %1163 = vmatpush1.bf16.msra.mxu1 %v1162_v40 }
 0x1d7   :  { %1119 = vmatmul.mubr.msk.f32.vlgmr.msra.gmra.mrb[0].mxu1 %vm484_vm0, %v594_v15 }
 0x1d8   :  { %704 = vmatprep.mubr.f32.mxu1 %v1215_v19 }
 0x1db   :  { %1120 = vmatmul.mubr.msk.f32.gmra.mrb[2].mxu1 %vm484_vm0, %v595_v43 }
 0x1dc   :  { %710 = vmatprep.mubr.f32.mxu1 %v1215_v19 }
 0x1df   :  { %1121 = vmatmul.mubr.msk.f32.gmra.mrb[4].mxu1 %vm484_vm0, %v596_v44  ;;  %v762_v44 = vpop.permute.xlu1 %761 }
 0x1e0   :  { %716 = vmatprep.mubr.f32.mxu1 %v1215_v19 }
 0x1e3   :  { %1122 = vmatmul.mubr.msk.f32.gmra.mrb[6].mxu1 %vm484_vm0, %v597_v12 }
 0x1e4   :  { %984 = vmatprep.mubr.f32.mxu1 %v1215_v19 }
 0x2aa   :  { %v700_v48 = vpop.f32.mrb[0].mxu1 }
 0x2ab   :  { %v702_v55 = vpop.f32.mrb[1].mxu1  ;;  %v701_v57 = vadd.f32 %v700_v48, %v605_v53 }
 0x2ac   :  { %v703_v60 = vadd.f32 %v702_v55, %v605_v53  ;;  %v767_v53 = vpop.permute.xlu0 %766 }
 0x2ad   :  { %v1635_v2 = vadd.f32 %v701_v57, %v448_v52 }
 0x2ae   :  { %v706_v51 = vpop.f32.mrb[2].mxu1  ;;  %v1631_v0 = vadd.f32 %v703_v60, %v449_v25 }
 0x2af   :  { %v707_v26 = vadd.f32 %v706_v51, %v610_v4  ;;  %v708_v38 = vpop.f32.mrb[3].mxu1  ;;  %v731_v52 = vmax.f32 %v1635_v2, 0.0 }
 0x2b0   :  { %v709_v1 = vadd.f32 %v708_v38, %v610_v4  ;;  %v732_v25 = vmax.f32 %v1631_v0, 0.0 }
 0x2b1   :  { %v1639_v32 = vadd.f32 %v707_v26, %v450_v16 }
 0x2b2   :  { %v1643_v45 = vadd.f32 %v709_v1, %v451_v34  ;;  %v712_v5 = vpop.f32.mrb[4].mxu1 }
 0x2b3   :  { %v733_v7 = vmax.f32 %v1639_v32, 0.0  ;;  %v714_v20 = vpop.f32.mrb[5].mxu1  ;;  %v713_v9 = vadd.f32 %v712_v5, %v615_v6 }
 0x2b4   :  { %v734_v8 = vmax.f32 %v1643_v45, 0.0  ;;  %v715_v13 = vadd.f32 %v714_v20, %v615_v6 }
 0x2b5   :  { %v1166_v34 = vpack.c.bf16 %v733_v7, %v731_v52  ;;  %v1663_v14 = vadd.f32 %v713_v9, %v452_v3  ;;  %v1124_v3 = vld [vmem:[%s1759_s9 + $0x28] sm:$0xff] }
 0x2b6   :  { %v718_v16 = vpop.f32.mrb[6].mxu1  ;;  %v1164_v22 = vpack.c.bf16 %v734_v8, %v732_v25  ;;  %v1659_v11 = vadd.f32 %v715_v13, %v453_v46  ;;  %v1135_v13 = vld [vmem:[%s1760_s11 + $0x20] sm:$0xff]  ;;  %v1136_v9 = vld [vmem:[%s1760_s11 + $0x28] sm:$0xff] }
 0x2b7   :  { %v719_v35 = vadd.f32 %v718_v16, %v620_v56  ;;  %v720_v10 = vpop.f32.mrb[7].mxu1  ;;  %v735_v50 = vmax.f32 %v1663_v14, 0.0  ;;  %v1138_v16 = vld [vmem:[%s1760_s11 + $0x38] sm:$0xff] }
 0x2b8   :  { %v721_v47 = vadd.f32 %v720_v10, %v620_v56  ;;  %1165 = vmatprep.subr.bf16.mxu0 %v1164_v22  ;;  %v736_v62 = vmax.f32 %v1659_v11, 0.0  ;;  %v1137_v56 = vld [vmem:[%s1760_s11 + $0x30] sm:$0xff]  ;;  %v891_v22 = vpop.permute.xlu1 %890  ;;  %v1025_v11 = vld [vmem:[%s1761_s13] sm:$0x7] }
 0x2b9   :  { %v1667_v17 = vadd.f32 %v719_v35, %v454_v37  ;;  %1167 = vmatpush1.bf16.msra.mxu0 %v1166_v34  ;;  %v1126_v37 = vld [vmem:[%s1759_s9 + $0x38] sm:$0xff] }
 0x2ba   :  { %v1671_v28 = vadd.f32 %v721_v47, %v455_v63  ;;  %v1125_v63 = vld [vmem:[%s1759_s9 + $0x30] sm:$0xff] }
 0x2bb   :  { %v737_v21 = vmax.f32 %v1667_v17, 0.0 }
 0x2bc   :  { %v738_v46 = vmax.f32 %v1671_v28, 0.0 }
 0x2bd   :  { %v1170_v61 = vpack.c.bf16 %v737_v21, %v735_v50 }
 0x2be   :  { %v1168_v59 = vpack.c.bf16 %v738_v46, %v736_v62 }
 0x2c0   :  { %1169 = vmatprep.subr.bf16.mxu0 %v1168_v59  ;;  %v896_v59 = vpop.permute.xlu0 %895 }
 0x2c1   :  { %1171 = vmatpush1.bf16.msra.mxu0 %v1170_v61 }
 0x2c4   :  { %1131 = vmatmul.mubr.msk.f32.vlgmr.msra.gmra.mrb[8].mxu0 %vm484_vm0, %v1123_v24 }
 0x2c5   :  { %851 = vmatprep.mubr.f32.mxu0 %v1215_v19 }
 0x2c8   :  { %1132 = vmatmul.mubr.msk.f32.gmra.mrb[10].mxu0 %vm484_vm0, %v1124_v3 }
 0x2c9   :  { %857 = vmatprep.mubr.f32.mxu0 %v1215_v19 }
 0x2cc   :  { %1133 = vmatmul.mubr.msk.f32.gmra.mrb[12].mxu0 %vm484_vm0, %v1125_v63 }
 0x2cd   :  { %863 = vmatprep.mubr.f32.mxu0 %v1215_v19 }
 0x2d0   :  { %1134 = vmatmul.mubr.msk.f32.gmra.mrb[14].mxu0 %vm484_vm0, %v1126_v37 }
 0x2d1   :  { %1099 = vmatprep.mubr.f32.mxu0 %v1215_v19 }
 0x397   :  { %v847_v29 = vpop.f32.mrb[8].mxu0 }
 0x398   :  { %v849_v39 = vpop.f32.mrb[9].mxu0  ;;  %v848_v54 = vadd.f32 %v847_v29, %v752_v23 }
 0x399   :  { %v850_v58 = vadd.f32 %v849_v39, %v752_v23  ;;  %v901_v39 = vpop.permute.xlu1 %900 }
 0x39a   :  { %v870_v31 = vmax.f32 %v848_v54, 0.0 }
 0x39b   :  { %v853_v49 = vpop.f32.mrb[10].mxu0  ;;  %v871_v36 = vmax.f32 %v850_v58, 0.0 }
 0x39c   :  { %v854_v42 = vadd.f32 %v853_v49, %v757_v27  ;;  %v855_v18 = vpop.f32.mrb[11].mxu0 }
 0x39d   :  { %v856_v30 = vadd.f32 %v855_v18, %v757_v27  ;;  %v1030_v17 = vpop.permute.xlu1 %1029 }
 0x39e   :  { %v872_v33 = vmax.f32 %v854_v42, 0.0 }
 0x39f   :  { %v873_v40 = vmax.f32 %v856_v30, 0.0  ;;  %v859_v41 = vpop.f32.mrb[12].mxu0 }
 0x3a0   :  { %v1174_v15 = vpack.c.bf16 %v872_v33, %v870_v31  ;;  %v861_v43 = vpop.f32.mrb[13].mxu0  ;;  %v860_v48 = vadd.f32 %v859_v41, %v762_v44  ;;  %v906_v31 = vpop.permute.xlu0 %905 }
 0x3a1   :  { %v1172_v12 = vpack.c.bf16 %v873_v40, %v871_v36  ;;  %v862_v55 = vadd.f32 %v861_v43, %v762_v44 }
 0x3a2   :  { %v874_v26 = vmax.f32 %v860_v48, 0.0 }
 0x3a3   :  { %v865_v60 = vpop.f32.mrb[14].mxu0  ;;  %1173 = vmatprep.subr.bf16.mxu1 %v1172_v12  ;;  %v875_v1 = vmax.f32 %v862_v55, 0.0 }
 0x3a4   :  { %v866_v57 = vadd.f32 %v865_v60, %v767_v53  ;;  %v867_v4 = vpop.f32.mrb[15].mxu0  ;;  %1175 = vmatpush1.bf16.msra.mxu1 %v1174_v15 }
 0x3a5   :  { %v868_v51 = vadd.f32 %v867_v4, %v767_v53 }
 0x3a6   :  { %v876_v38 = vmax.f32 %v866_v57, 0.0 }
 0x3a7   :  { %v877_v5 = vmax.f32 %v868_v51, 0.0 }
 0x3a8   :  { %v1178_v6 = vpack.c.bf16 %v876_v38, %v874_v26 }
 0x3a9   :  { %v1176_v20 = vpack.c.bf16 %v877_v5, %v875_v1 }
 0x3ab   :  { %1177 = vmatprep.subr.bf16.mxu1 %v1176_v20 }
 0x3ac   :  { %1179 = vmatpush1.bf16.msra.mxu1 %v1178_v6 }
 0x3af   :  { %1143 = vmatmul.mubr.msk.f32.vlgmr.msra.gmra.mrb[8].mxu1 %vm484_vm0, %v1135_v13 }
 0x3b0   :  { %990 = vmatprep.mubr.f32.mxu1 %v1215_v19 }
 0x3b3   :  { %1144 = vmatmul.mubr.msk.f32.gmra.mrb[10].mxu1 %vm484_vm0, %v1136_v9 }
 0x3b4   :  { %996 = vmatprep.mubr.f32.mxu1 %v1215_v19 }
 0x3b7   :  { %1145 = vmatmul.mubr.msk.f32.gmra.mrb[12].mxu1 %vm484_vm0, %v1137_v56 }
 0x3b8   :  { %1002 = vmatprep.mubr.f32.mxu1 %v1215_v19 }
 0x3bb   :  { %1146 = vmatmul.mubr.msk.f32.gmra.mrb[14].mxu1 %vm484_vm0, %v1138_v16 }
 0x482   :  { %v986_v34 = vpop.f32.mrb[8].mxu1 }
 0x483   :  { %v987_v35 = vadd.f32 %v986_v34, %v891_v22  ;;  %v988_v10 = vpop.f32.mrb[9].mxu1 }
 0x484   :  { %v989_v47 = vadd.f32 %v988_v10, %v891_v22 }
 0x485   :  { %v1009_v24 = vadd.f32 %v987_v35, %v731_v52 }
 0x486   :  { %v992_v61 = vpop.f32.mrb[10].mxu1  ;;  %v1010_v19 = vadd.f32 %v989_v47, %v732_v25 }
 0x487   :  { %v993_v3 = vadd.f32 %v992_v61, %v896_v59  ;;  %v994_v63 = vpop.f32.mrb[11].mxu1  ;;  %v1017_v27 = vmax.f32 %v1009_v24, 0.0 }
 0x488   :  { %v995_v37 = vadd.f32 %v994_v63, %v896_v59  ;;  %v1018_v2 = vmax.f32 %v1010_v19, 0.0 }
 0x489   :  { %v1011_v29 = vadd.f32 %v993_v3, %v733_v7 }
 0x48a   :  { %v1012_v23 = vadd.f32 %v995_v37, %v734_v8  ;;  %v998_v54 = vpop.f32.mrb[12].mxu1 }
 0x48b   :  { %v1019_v58 = vmax.f32 %v1011_v29, 0.0  ;;  %v999_v49 = vadd.f32 %v998_v54, %v901_v39  ;;  %v1000_v42 = vpop.f32.mrb[13].mxu1 }
 0x48c   :  { %v1020_v52 = vmax.f32 %v1012_v23, 0.0  ;;  %v1001_v18 = vadd.f32 %v1000_v42, %v901_v39 }
 0x48d   :  { %v1182_v30 = vpack.c.bf16 %v1019_v58, %v1017_v27  ;;  %v1013_v32 = vadd.f32 %v999_v49, %v735_v50 }
 0x48e   :  { %v1004_v0 = vpop.f32.mrb[14].mxu1  ;;  %v1180_v25 = vpack.c.bf16 %v1020_v52, %v1018_v2  ;;  %v1014_v45 = vadd.f32 %v1001_v18, %v736_v62 }
 0x48f   :  { %v1005_v7 = vadd.f32 %v1004_v0, %v906_v31  ;;  %v1006_v33 = vpop.f32.mrb[15].mxu1  ;;  %v1021_v41 = vmax.f32 %v1013_v32, 0.0 }
 0x490   :  { %v1007_v8 = vadd.f32 %v1006_v33, %v906_v31  ;;  %1181 = vmatprep.subr.bf16.mxu0 %v1180_v25  ;;  %v1022_v43 = vmax.f32 %v1014_v45, 0.0 }
 0x491   :  { %v1015_v36 = vadd.f32 %v1005_v7, %v737_v21  ;;  %1183 = vmatpush1.bf16.msra.mxu0 %v1182_v30 }
 0x492   :  { %v1016_v40 = vadd.f32 %v1007_v8, %v738_v46 }
 0x493   :  { %v1023_v15 = vmax.f32 %v1015_v36, 0.0 }
 0x494   :  { %v1024_v44 = vmax.f32 %v1016_v40, 0.0 }
 0x495   :  { %v1186_v14 = vpack.c.bf16 %v1023_v15, %v1021_v41 }
 0x496   :  { %v1184_v50 = vpack.c.bf16 %v1024_v44, %v1022_v43 }
 0x498   :  { %1185 = vmatprep.subr.bf16.mxu0 %v1184_v50 }
 0x499   :  { %1187 = vmatpush1.bf16.msra.mxu0 %v1186_v14 }
 0x49c   :  { %1147 = vmatmul.mubr.msk.f32.vlgmr.msra.gmra.mrb[16].mxu0 %vm484_vm0, %v1025_v11 }
 0x56f   :  { %v1101_v21 = vpop.f32.mrb[16].mxu0 }
 0x570   :  { %v1102_v62 = vadd.f32 %v1101_v21, %v1030_v17  ;;  %v1103_v12 = vpop.f32.mrb[17].mxu0 }
 0x571   :  { %v1104_v28 = vadd.f32 %v1103_v12, %v1030_v17 }
 0x573   :  { %v1108_v46 = vcombine.low %v1102_v62, %v1104_v28 }
 0x575   :  { %1110 = vst [vmem:[%s1762_s15] sm:$0x77] %v1108_v46 }

</bundles_post_ra>
